<compile_context>
chip_gen: v5e
topology: v5e:2x2
jax: 0.10.0
libtpu: 0.0.40
codegen_flags: <defaults>
</compile_context>

<pallas_src>
import jax
import jax.numpy as jnp
from jax.experimental import pallas as pl
from jax.experimental.pallas import tpu as pltpu

EPS = 1e-5  # nn.BatchNorm2d default


# ----------------------------------------------------------------------------
# Fused basic-block kernel (factory closes over the dropout flag only)
# ----------------------------------------------------------------------------
def make_basic_block_kernel(use_dropout):
    def kernel(*refs):
        if use_dropout:
            (x_ref, sh_ref, t1_ref, t2_ref, gpool_ref,
             g1_ref, b1_ref, g2_ref, b2_ref, mask_ref, o_ref) = refs
        else:
            (x_ref, sh_ref, t1_ref, t2_ref, gpool_ref,
             g1_ref, b1_ref, g2_ref, b2_ref, o_ref) = refs
            mask_ref = None

        x = x_ref[...]                      # (NH, WCi) f32 (kept f32 for the residual)
        xb = x.astype(jnp.bfloat16)
        s_up = sh_ref[0]                    # (NH, NH) bf16 0/1: selects row h-1, 0 at h==0
        s_dn = sh_ref[1]                    # (NH, NH) bf16 0/1: selects row h+1, 0 at h==H-1
        G = gpool_ref[...]                  # (WCo, WCo) f32 same-channel lane pooling

        def conv3x3(act_bf, t_ref):
            # H-shifted bands via exact 0/1 selection matmuls; W shift + zero padding are
            # already folded into the block-Toeplitz taps t_ref[kh] of shape (WC, WCo).
            up = jnp.dot(s_up, act_bf,
                         preferred_element_type=jnp.float32).astype(jnp.bfloat16)
            dn = jnp.dot(s_dn, act_bf,
                         preferred_element_type=jnp.float32).astype(jnp.bfloat16)
            acc = jnp.dot(up, t_ref[0], preferred_element_type=jnp.float32)
            acc = acc + jnp.dot(act_bf, t_ref[1], preferred_element_type=jnp.float32)
            acc = acc + jnp.dot(dn, t_ref[2], preferred_element_type=jnp.float32)
            return acc

        def bn_train(acc, gamma, beta):
            # Training-mode batch stats per channel over (N, H, W), kept lane-dense:
            # reduce rows first (cheap VPU/XLU), then pool same-channel lanes with one
            # tiny, sublane-aligned (8, WC) @ (WC, WC) matmul.
            nh, wc = acc.shape
            part = jnp.mean(acc.reshape(nh // 8, 8, wc), axis=0)            # (8, WC)
            mu = jnp.mean(jnp.dot(part, G, preferred_element_type=jnp.float32),
                          axis=0, keepdims=True)                            # (1, WC)
            d = acc - mu
            part2 = jnp.mean((d * d).reshape(nh // 8, 8, wc), axis=0)
            var = jnp.mean(jnp.dot(part2, G, preferred_element_type=jnp.float32),
                           axis=0, keepdims=True)                           # (1, WC)
            scale = gamma * jax.lax.rsqrt(var + EPS)
            return d * scale + beta

        # conv1 -> bn1 -> relu
        acc1 = conv3x3(xb, t1_ref)
        h1 = jnp.maximum(bn_train(acc1, g1_ref[...], b1_ref[...]), 0.0)

        # dropout (training only): pre-scaled keep-mask, single multiply.
        if use_dropout:
            h1 = h1 * mask_ref[...]

        # conv2 -> bn2 -> +identity -> relu
        acc2 = conv3x3(h1.astype(jnp.bfloat16), t2_ref)
        out = bn_train(acc2, g2_ref[...], b2_ref[...]) + x
        o_ref[...] = jnp.maximum(out, 0.0)

    return kernel


# ----------------------------------------------------------------------------
# Wrapper-side constant operands
# ----------------------------------------------------------------------------
def build_row_toeplitz(w_oihw, W):
    """Fold a 3x3 conv (OIHW weights) into 3 block-Toeplitz taps (W*Cin, W*Cout), one per
    kh: T[kh][wi*Ci+ci, wo*Co+co] = w[co, ci, kh, kw] iff wi == wo + kw - 1.  Out-of-range
    wi are simply absent, which is exactly zero padding along W."""
    Co, Ci, KH, KW = w_oihw.shape
    taps = []
    for kh in range(KH):
        t = jnp.zeros((W * Ci, W * Co), jnp.float32)
        for kw in range(KW):
            e = jnp.eye(W, k=1 - kw, dtype=jnp.float32)
            b = jnp.transpose(w_oihw[:, :, kh, kw]).astype(jnp.float32)     # (Ci, Co)
            t = t + jnp.kron(e, b)
        taps.append(t)
    return jnp.stack(taps, axis=0)                                          # (3, W*Ci, W*Co)


def build_h_shift_matrices(N, H):
    """(2, NH, NH) 0/1 selectors: [0] picks row h-1 (0 at h==0), [1] picks row h+1
    (0 at h==H-1).  Batch boundaries are handled because those rows are already zeroed."""
    NH = N * H
    r = jnp.arange(NH)
    h = r % H
    up = ((r[:, None] - 1) == r[None, :]) & (h[:, None] != 0)
    dn = ((r[:, None] + 1) == r[None, :]) & (h[:, None] != (H - 1))
    return jnp.stack([up, dn], axis=0).astype(jnp.bfloat16)


def build_channel_pool(W, Co):
    """(W*Co, W*Co): G[i, j] = 1/W iff i % Co == j % Co, so (stat @ G) averages the W
    same-channel lanes and broadcasts the per-channel result back to every lane."""
    c = jnp.arange(W * Co) % Co
    return (c[:, None] == c[None, :]).astype(jnp.float32) * (1.0 / W)


# ----------------------------------------------------------------------------
# Forward wrapper
# ----------------------------------------------------------------------------
def resnet_basic_block_forward(x_nchw, w1, g1, b1, w2, g2, b2, *,
                               stride=1, training=False, dropout_p=0.1, seed=0):
    if stride != 1:
        # TODO(synk): stride==2 avg-pool prologue + user-supplied downsample module are
        #             not implemented; the default config uses stride=1.
        raise NotImplementedError("stride != 1 not supported in this kernel")
    N, Ci, H, W = x_nchw.shape
    Co = w1.shape[0]
    assert Ci == Co, "residual add requires inplanes == planes when downsample is None"
    NH, WCi, WCo = N * H, W * Ci, W * Co
    assert NH % 8 == 0, "N*H must be a multiple of 8 (sublane-aligned row count)"

    # NCHW -> lane-dense rows (NH, W*C); lane index j = w*C + c.
    x2d = jnp.transpose(x_nchw, (0, 2, 3, 1)).reshape(NH, WCi).astype(jnp.float32)

    # Constant operands.  TODO(synk): for inference, precompute these once per weight set
    # instead of rebuilding them on every forward call.
    t1 = build_row_toeplitz(w1, W).astype(jnp.bfloat16)           # (3, WCi, WCo)
    t2 = build_row_toeplitz(w2, W).astype(jnp.bfloat16)           # (3, WCo, WCo)
    shifts = build_h_shift_matrices(N, H)                         # (2, NH, NH) bf16
    gpool = build_channel_pool(W, Co)                             # (WCo, WCo) f32
    g1f = jnp.tile(g1.reshape(1, Co).astype(jnp.float32), (1, W))
    b1f = jnp.tile(b1.reshape(1, Co).astype(jnp.float32), (1, W))
    g2f = jnp.tile(g2.reshape(1, Co).astype(jnp.float32), (1, W))
    b2f = jnp.tile(b2.reshape(1, Co).astype(jnp.float32), (1, W))

    use_dropout = bool(training) and dropout_p > 0.0
    args = [x2d, shifts, t1, t2, gpool, g1f, b1f, g2f, b2f]
    if use_dropout:
        # TODO(synk): keep-mask comes from jax.random, so it never bit-matches torch's RNG.
        keep = jax.random.bernoulli(jax.random.PRNGKey(seed), 1.0 - dropout_p, (NH, WCo))
        args.append(keep.astype(jnp.float32) * (1.0 / (1.0 - dropout_p)))

    vmem = pl.BlockSpec(memory_space=pltpu.MemorySpace.VMEM)
    out = pl.pallas_call(
        make_basic_block_kernel(use_dropout),
        out_shape=jax.ShapeDtypeStruct((NH, WCo), jnp.float32),
        in_specs=[vmem] * len(args),
        out_specs=vmem,
    )(*args)

    # lane-dense (NH, W*Co) -> NCHW
    return out.reshape(N, H, W, Co).transpose(0, 3, 1, 2)


# ----------------------------------------------------------------------------
# Deterministic parameter init (mirrors init_layer / init_bn / init_weights)
# ----------------------------------------------------------------------------
def xavier_uniform_conv(key, out_c, in_c, kh, kw):
    fan_in = in_c * kh * kw
    fan_out = out_c * kh * kw
    bound = (6.0 / (fan_in + fan_out)) ** 0.5
    return jax.random.uniform(key, (out_c, in_c, kh, kw), jnp.float32, -bound, bound)


# ----------------------------------------------------------------------------
# Pure-JAX reference (train-mode BN batch stats, dropout off)
# ----------------------------------------------------------------------------
def reference_forward(x, w1, g1, b1, w2, g2, b2):
    def conv(h, w):
        return jax.lax.conv_general_dilated(
            h, w, window_strides=(1, 1), padding=((1, 1), (1, 1)),
            dimension_numbers=('NCHW', 'OIHW', 'NCHW'))

    def bn(h, g, b):
        mu = jnp.mean(h, axis=(0, 2, 3), keepdims=True)
        var = jnp.mean((h - mu) ** 2, axis=(0, 2, 3), keepdims=True)
        return ((h - mu) * jax.lax.rsqrt(var + EPS) * g.reshape(1, -1, 1, 1)
                + b.reshape(1, -1, 1, 1))

    out = jnp.maximum(bn(conv(x, w1), g1, b1), 0.0)
    out = bn(conv(out, w2), g2, b2)
    out = out + x
    return jnp.maximum(out, 0.0)


if __name__ == "__main__":
    key = jax.random.PRNGKey(0)
    k_x, k_w1, k_w2, k_g1, k_b1, k_g2, k_b2 = jax.random.split(key, 7)

    # inplanes == planes (required by the residual path with downsample=None)
    N, C, H, W = 2, 8, 16, 16          # W*C = 128 -> fully lane-dense
    x = jax.random.normal(k_x, (N, C, H, W), jnp.float32)
    w1 = xavier_uniform_conv(k_w1, C, C, 3, 3)      # conv1.weight (bias=False)
    w2 = xavier_uniform_conv(k_w2, C, C, 3, 3)      # conv2.weight (bias=False)

    # ---- Test 1: faithful module init (bn1 gamma=1/beta=0, bn2 gamma=0/beta=0) ----
    g1 = jnp.ones((C,), jnp.float32)
    b1 = jnp.zeros((C,), jnp.float32)
    g2 = jnp.zeros((C,), jnp.float32)               # nn.init.constant_(bn2.weight, 0)
    b2 = jnp.zeros((C,), jnp.float32)
    out = resnet_basic_block_forward(x, w1, g1, b1, w2, g2, b2, training=False)
    out = jax.block_until_ready(out)
    assert out.shape == (N, C, H, W), out.shape
    ref = reference_forward(x, w1, g1, b1, w2, g2, b2)
    err1 = float(jnp.max(jnp.abs(out - ref)))
    assert err1 < 1e-5, f"init-config max abs err too large: {err1}"

    # ---- Test 2: non-trivial affine params to exercise the full conv2/bn2 path ----
    g1b = 1.0 + 0.1 * jax.random.normal(k_g1, (C,), jnp.float32)
    b1b = 0.1 * jax.random.normal(k_b1, (C,), jnp.float32)
    g2b = 1.0 + 0.1 * jax.random.normal(k_g2, (C,), jnp.float32)
    b2b = 0.1 * jax.random.normal(k_b2, (C,), jnp.float32)
    out2 = resnet_basic_block_forward(x, w1, g1b, b1b, w2, g2b, b2b, training=False)
    out2 = jax.block_until_ready(out2)
    ref2 = reference_forward(x, w1, g1b, b1b, w2, g2b, b2b)
    err2 = float(jnp.max(jnp.abs(out2 - ref2)))
    assert err2 < 5e-2, f"max abs err too large (bf16 matmul path): {err2}"

    # ---- Smoke test: training mode (dropout p=0.1 via pre-scaled keep-mask) ----
    out3 = resnet_basic_block_forward(x, w1, g1, b1, w2, g2, b2,
                                      training=True, dropout_p=0.1, seed=1234)
    out3 = jax.block_until_ready(out3)
    assert out3.shape == (N, C, H, W)
    assert bool(jnp.all(jnp.isfinite(out3)))

    print("KERNEL_OK")
</pallas_src>

<mosaic_0001>
module attributes {stable_mosaic.version = 11 : i64} {
  func.func @kernel(%arg0: memref<32x128xf32, #tpu.memory_space<vmem>>, %arg1: memref<2x32x32xbf16, #tpu.memory_space<vmem>>, %arg2: memref<3x128x128xbf16, #tpu.memory_space<vmem>>, %arg3: memref<3x128x128xbf16, #tpu.memory_space<vmem>>, %arg4: memref<128x128xf32, #tpu.memory_space<vmem>>, %arg5: memref<1x128xf32, #tpu.memory_space<vmem>>, %arg6: memref<1x128xf32, #tpu.memory_space<vmem>>, %arg7: memref<1x128xf32, #tpu.memory_space<vmem>>, %arg8: memref<1x128xf32, #tpu.memory_space<vmem>>, %arg9: memref<32x128xf32, #tpu.memory_space<vmem>>) attributes {dimension_semantics = [], scalar_prefetch = 0 : i64, scratch_operands = 0 : i64, tpu.core_type = #tpu.core_type<tc>} {
    %c0 = arith.constant 0 : index
    %c0_0 = arith.constant 0 : index
    %0 = vector.load %arg0[%c0, %c0_0] : memref<32x128xf32, #tpu.memory_space<vmem>>, vector<32x128xf32>
    %1 = arith.truncf %0 : vector<32x128xf32> to vector<32x128xbf16>
    %c0_1 = arith.constant 0 : index
    %c0_2 = arith.constant 0 : index
    %c0_3 = arith.constant 0 : index
    %2 = vector.load %arg1[%c0_1, %c0_2, %c0_3] : memref<2x32x32xbf16, #tpu.memory_space<vmem>>, vector<1x32x32xbf16>
    %3 = vector.shape_cast %2 : vector<1x32x32xbf16> to vector<32x32xbf16>
    %c1 = arith.constant 1 : index
    %c0_4 = arith.constant 0 : index
    %c0_5 = arith.constant 0 : index
    %4 = vector.load %arg1[%c1, %c0_4, %c0_5] : memref<2x32x32xbf16, #tpu.memory_space<vmem>>, vector<1x32x32xbf16>
    %5 = vector.shape_cast %4 : vector<1x32x32xbf16> to vector<32x32xbf16>
    %c0_6 = arith.constant 0 : index
    %c0_7 = arith.constant 0 : index
    %6 = vector.load %arg4[%c0_6, %c0_7] : memref<128x128xf32, #tpu.memory_space<vmem>>, vector<128x128xf32>
    %cst = arith.constant dense<0.000000e+00> : vector<32x128xf32>
    %7 = tpu.matmul %3, %1, %cst {dimension_numbers = #tpu.dot_dimension_numbers<[1], [0], [0], [1], [0, 0, 1, 1], [], []>} : vector<32x32xbf16>, vector<32x128xbf16>, vector<32x128xf32> -> vector<32x128xf32>
    %8 = arith.truncf %7 : vector<32x128xf32> to vector<32x128xbf16>
    %cst_8 = arith.constant dense<0.000000e+00> : vector<32x128xf32>
    %9 = tpu.matmul %5, %1, %cst_8 {dimension_numbers = #tpu.dot_dimension_numbers<[1], [0], [0], [1], [0, 0, 1, 1], [], []>} : vector<32x32xbf16>, vector<32x128xbf16>, vector<32x128xf32> -> vector<32x128xf32>
    %10 = arith.truncf %9 : vector<32x128xf32> to vector<32x128xbf16>
    %c0_9 = arith.constant 0 : index
    %c0_10 = arith.constant 0 : index
    %c0_11 = arith.constant 0 : index
    %11 = vector.load %arg2[%c0_9, %c0_10, %c0_11] : memref<3x128x128xbf16, #tpu.memory_space<vmem>>, vector<1x128x128xbf16>
    %12 = vector.shape_cast %11 : vector<1x128x128xbf16> to vector<128x128xbf16>
    %cst_12 = arith.constant dense<0.000000e+00> : vector<32x128xf32>
    %13 = tpu.matmul %8, %12, %cst_12 {dimension_numbers = #tpu.dot_dimension_numbers<[1], [0], [0], [1], [0, 0, 1, 1], [], []>} : vector<32x128xbf16>, vector<128x128xbf16>, vector<32x128xf32> -> vector<32x128xf32>
    %c1_13 = arith.constant 1 : index
    %c0_14 = arith.constant 0 : index
    %c0_15 = arith.constant 0 : index
    %14 = vector.load %arg2[%c1_13, %c0_14, %c0_15] : memref<3x128x128xbf16, #tpu.memory_space<vmem>>, vector<1x128x128xbf16>
    %15 = vector.shape_cast %14 : vector<1x128x128xbf16> to vector<128x128xbf16>
    %cst_16 = arith.constant dense<0.000000e+00> : vector<32x128xf32>
    %16 = tpu.matmul %1, %15, %cst_16 {dimension_numbers = #tpu.dot_dimension_numbers<[1], [0], [0], [1], [0, 0, 1, 1], [], []>} : vector<32x128xbf16>, vector<128x128xbf16>, vector<32x128xf32> -> vector<32x128xf32>
    %17 = arith.addf %13, %16 : vector<32x128xf32>
    %c2 = arith.constant 2 : index
    %c0_17 = arith.constant 0 : index
    %c0_18 = arith.constant 0 : index
    %18 = vector.load %arg2[%c2, %c0_17, %c0_18] : memref<3x128x128xbf16, #tpu.memory_space<vmem>>, vector<1x128x128xbf16>
    %19 = vector.shape_cast %18 : vector<1x128x128xbf16> to vector<128x128xbf16>
    %cst_19 = arith.constant dense<0.000000e+00> : vector<32x128xf32>
    %20 = tpu.matmul %10, %19, %cst_19 {dimension_numbers = #tpu.dot_dimension_numbers<[1], [0], [0], [1], [0, 0, 1, 1], [], []>} : vector<32x128xbf16>, vector<128x128xbf16>, vector<32x128xf32> -> vector<32x128xf32>
    %21 = arith.addf %17, %20 : vector<32x128xf32>
    %c0_20 = arith.constant 0 : index
    %c0_21 = arith.constant 0 : index
    %22 = vector.load %arg5[%c0_20, %c0_21] : memref<1x128xf32, #tpu.memory_space<vmem>>, vector<1x128xf32>
    %c0_22 = arith.constant 0 : index
    %c0_23 = arith.constant 0 : index
    %23 = vector.load %arg6[%c0_22, %c0_23] : memref<1x128xf32, #tpu.memory_space<vmem>>, vector<1x128xf32>
    %24 = vector.shape_cast %21 : vector<32x128xf32> to vector<4x8x128xf32>
    %cst_24 = arith.constant dense<0.000000e+00> : vector<8x128xf32>
    %25 = vector.multi_reduction <add>, %24, %cst_24 [0] : vector<4x8x128xf32> to vector<8x128xf32>
    %cst_25 = arith.constant 4.000000e+00 : f32
    %26 = vector.broadcast %cst_25 : f32 to vector<8x128xf32>
    %27 = arith.divf %25, %26 : vector<8x128xf32>
    %cst_26 = arith.constant dense<0.000000e+00> : vector<8x128xf32>
    %28 = tpu.matmul %27, %6, %cst_26 {dimension_numbers = #tpu.dot_dimension_numbers<[1], [0], [0], [1], [0, 0, 1, 1], [], []>} : vector<8x128xf32>, vector<128x128xf32>, vector<8x128xf32> -> vector<8x128xf32>
    %cst_27 = arith.constant dense<0.000000e+00> : vector<128xf32>
    %29 = vector.multi_reduction <add>, %28, %cst_27 [0] : vector<8x128xf32> to vector<128xf32>
    %30 = vector.shape_cast %29 : vector<128xf32> to vector<1x128xf32>
    %cst_28 = arith.constant 8.000000e+00 : f32
    %31 = vector.broadcast %cst_28 : f32 to vector<1x128xf32>
    %32 = arith.divf %30, %31 : vector<1x128xf32>
    %33 = vector.broadcast %32 : vector<1x128xf32> to vector<32x128xf32>
    %34 = arith.subf %21, %33 : vector<32x128xf32>
    %35 = arith.mulf %34, %34 : vector<32x128xf32>
    %36 = vector.shape_cast %35 : vector<32x128xf32> to vector<4x8x128xf32>
    %cst_29 = arith.constant dense<0.000000e+00> : vector<8x128xf32>
    %37 = vector.multi_reduction <add>, %36, %cst_29 [0] : vector<4x8x128xf32> to vector<8x128xf32>
    %cst_30 = arith.constant 4.000000e+00 : f32
    %38 = vector.broadcast %cst_30 : f32 to vector<8x128xf32>
    %39 = arith.divf %37, %38 : vector<8x128xf32>
    %cst_31 = arith.constant dense<0.000000e+00> : vector<8x128xf32>
    %40 = tpu.matmul %39, %6, %cst_31 {dimension_numbers = #tpu.dot_dimension_numbers<[1], [0], [0], [1], [0, 0, 1, 1], [], []>} : vector<8x128xf32>, vector<128x128xf32>, vector<8x128xf32> -> vector<8x128xf32>
    %cst_32 = arith.constant dense<0.000000e+00> : vector<128xf32>
    %41 = vector.multi_reduction <add>, %40, %cst_32 [0] : vector<8x128xf32> to vector<128xf32>
    %42 = vector.shape_cast %41 : vector<128xf32> to vector<1x128xf32>
    %cst_33 = arith.constant 8.000000e+00 : f32
    %43 = vector.broadcast %cst_33 : f32 to vector<1x128xf32>
    %44 = arith.divf %42, %43 : vector<1x128xf32>
    %cst_34 = arith.constant 9.99999974E-6 : f32
    %45 = vector.broadcast %cst_34 : f32 to vector<1x128xf32>
    %46 = arith.addf %44, %45 : vector<1x128xf32>
    %47 = math.rsqrt %46 : vector<1x128xf32>
    %48 = arith.mulf %22, %47 : vector<1x128xf32>
    %49 = vector.broadcast %48 : vector<1x128xf32> to vector<32x128xf32>
    %50 = arith.mulf %34, %49 : vector<32x128xf32>
    %51 = vector.broadcast %23 : vector<1x128xf32> to vector<32x128xf32>
    %52 = arith.addf %50, %51 : vector<32x128xf32>
    %cst_35 = arith.constant 0.000000e+00 : f32
    %53 = vector.broadcast %cst_35 : f32 to vector<32x128xf32>
    %54 = arith.maximumf %52, %53 : vector<32x128xf32>
    %55 = arith.truncf %54 : vector<32x128xf32> to vector<32x128xbf16>
    %cst_36 = arith.constant dense<0.000000e+00> : vector<32x128xf32>
    %56 = tpu.matmul %3, %55, %cst_36 {dimension_numbers = #tpu.dot_dimension_numbers<[1], [0], [0], [1], [0, 0, 1, 1], [], []>} : vector<32x32xbf16>, vector<32x128xbf16>, vector<32x128xf32> -> vector<32x128xf32>
    %57 = arith.truncf %56 : vector<32x128xf32> to vector<32x128xbf16>
    %cst_37 = arith.constant dense<0.000000e+00> : vector<32x128xf32>
    %58 = tpu.matmul %5, %55, %cst_37 {dimension_numbers = #tpu.dot_dimension_numbers<[1], [0], [0], [1], [0, 0, 1, 1], [], []>} : vector<32x32xbf16>, vector<32x128xbf16>, vector<32x128xf32> -> vector<32x128xf32>
    %59 = arith.truncf %58 : vector<32x128xf32> to vector<32x128xbf16>
    %c0_38 = arith.constant 0 : index
    %c0_39 = arith.constant 0 : index
    %c0_40 = arith.constant 0 : index
    %60 = vector.load %arg3[%c0_38, %c0_39, %c0_40] : memref<3x128x128xbf16, #tpu.memory_space<vmem>>, vector<1x128x128xbf16>
    %61 = vector.shape_cast %60 : vector<1x128x128xbf16> to vector<128x128xbf16>
    %cst_41 = arith.constant dense<0.000000e+00> : vector<32x128xf32>
    %62 = tpu.matmul %57, %61, %cst_41 {dimension_numbers = #tpu.dot_dimension_numbers<[1], [0], [0], [1], [0, 0, 1, 1], [], []>} : vector<32x128xbf16>, vector<128x128xbf16>, vector<32x128xf32> -> vector<32x128xf32>
    %c1_42 = arith.constant 1 : index
    %c0_43 = arith.constant 0 : index
    %c0_44 = arith.constant 0 : index
    %63 = vector.load %arg3[%c1_42, %c0_43, %c0_44] : memref<3x128x128xbf16, #tpu.memory_space<vmem>>, vector<1x128x128xbf16>
    %64 = vector.shape_cast %63 : vector<1x128x128xbf16> to vector<128x128xbf16>
    %cst_45 = arith.constant dense<0.000000e+00> : vector<32x128xf32>
    %65 = tpu.matmul %55, %64, %cst_45 {dimension_numbers = #tpu.dot_dimension_numbers<[1], [0], [0], [1], [0, 0, 1, 1], [], []>} : vector<32x128xbf16>, vector<128x128xbf16>, vector<32x128xf32> -> vector<32x128xf32>
    %66 = arith.addf %62, %65 : vector<32x128xf32>
    %c2_46 = arith.constant 2 : index
    %c0_47 = arith.constant 0 : index
    %c0_48 = arith.constant 0 : index
    %67 = vector.load %arg3[%c2_46, %c0_47, %c0_48] : memref<3x128x128xbf16, #tpu.memory_space<vmem>>, vector<1x128x128xbf16>
    %68 = vector.shape_cast %67 : vector<1x128x128xbf16> to vector<128x128xbf16>
    %cst_49 = arith.constant dense<0.000000e+00> : vector<32x128xf32>
    %69 = tpu.matmul %59, %68, %cst_49 {dimension_numbers = #tpu.dot_dimension_numbers<[1], [0], [0], [1], [0, 0, 1, 1], [], []>} : vector<32x128xbf16>, vector<128x128xbf16>, vector<32x128xf32> -> vector<32x128xf32>
    %70 = arith.addf %66, %69 : vector<32x128xf32>
    %c0_50 = arith.constant 0 : index
    %c0_51 = arith.constant 0 : index
    %71 = vector.load %arg7[%c0_50, %c0_51] : memref<1x128xf32, #tpu.memory_space<vmem>>, vector<1x128xf32>
    %c0_52 = arith.constant 0 : index
    %c0_53 = arith.constant 0 : index
    %72 = vector.load %arg8[%c0_52, %c0_53] : memref<1x128xf32, #tpu.memory_space<vmem>>, vector<1x128xf32>
    %73 = vector.shape_cast %70 : vector<32x128xf32> to vector<4x8x128xf32>
    %cst_54 = arith.constant dense<0.000000e+00> : vector<8x128xf32>
    %74 = vector.multi_reduction <add>, %73, %cst_54 [0] : vector<4x8x128xf32> to vector<8x128xf32>
    %cst_55 = arith.constant 4.000000e+00 : f32
    %75 = vector.broadcast %cst_55 : f32 to vector<8x128xf32>
    %76 = arith.divf %74, %75 : vector<8x128xf32>
    %cst_56 = arith.constant dense<0.000000e+00> : vector<8x128xf32>
    %77 = tpu.matmul %76, %6, %cst_56 {dimension_numbers = #tpu.dot_dimension_numbers<[1], [0], [0], [1], [0, 0, 1, 1], [], []>} : vector<8x128xf32>, vector<128x128xf32>, vector<8x128xf32> -> vector<8x128xf32>
    %cst_57 = arith.constant dense<0.000000e+00> : vector<128xf32>
    %78 = vector.multi_reduction <add>, %77, %cst_57 [0] : vector<8x128xf32> to vector<128xf32>
    %79 = vector.shape_cast %78 : vector<128xf32> to vector<1x128xf32>
    %cst_58 = arith.constant 8.000000e+00 : f32
    %80 = vector.broadcast %cst_58 : f32 to vector<1x128xf32>
    %81 = arith.divf %79, %80 : vector<1x128xf32>
    %82 = vector.broadcast %81 : vector<1x128xf32> to vector<32x128xf32>
    %83 = arith.subf %70, %82 : vector<32x128xf32>
    %84 = arith.mulf %83, %83 : vector<32x128xf32>
    %85 = vector.shape_cast %84 : vector<32x128xf32> to vector<4x8x128xf32>
    %cst_59 = arith.constant dense<0.000000e+00> : vector<8x128xf32>
    %86 = vector.multi_reduction <add>, %85, %cst_59 [0] : vector<4x8x128xf32> to vector<8x128xf32>
    %cst_60 = arith.constant 4.000000e+00 : f32
    %87 = vector.broadcast %cst_60 : f32 to vector<8x128xf32>
    %88 = arith.divf %86, %87 : vector<8x128xf32>
    %cst_61 = arith.constant dense<0.000000e+00> : vector<8x128xf32>
    %89 = tpu.matmul %88, %6, %cst_61 {dimension_numbers = #tpu.dot_dimension_numbers<[1], [0], [0], [1], [0, 0, 1, 1], [], []>} : vector<8x128xf32>, vector<128x128xf32>, vector<8x128xf32> -> vector<8x128xf32>
    %cst_62 = arith.constant dense<0.000000e+00> : vector<128xf32>
    %90 = vector.multi_reduction <add>, %89, %cst_62 [0] : vector<8x128xf32> to vector<128xf32>
    %91 = vector.shape_cast %90 : vector<128xf32> to vector<1x128xf32>
    %cst_63 = arith.constant 8.000000e+00 : f32
    %92 = vector.broadcast %cst_63 : f32 to vector<1x128xf32>
    %93 = arith.divf %91, %92 : vector<1x128xf32>
    %cst_64 = arith.constant 9.99999974E-6 : f32
    %94 = vector.broadcast %cst_64 : f32 to vector<1x128xf32>
    %95 = arith.addf %93, %94 : vector<1x128xf32>
    %96 = math.rsqrt %95 : vector<1x128xf32>
    %97 = arith.mulf %71, %96 : vector<1x128xf32>
    %98 = vector.broadcast %97 : vector<1x128xf32> to vector<32x128xf32>
    %99 = arith.mulf %83, %98 : vector<32x128xf32>
    %100 = vector.broadcast %72 : vector<1x128xf32> to vector<32x128xf32>
    %101 = arith.addf %99, %100 : vector<32x128xf32>
    %102 = arith.addf %101, %0 : vector<32x128xf32>
    %cst_65 = arith.constant 0.000000e+00 : f32
    %103 = vector.broadcast %cst_65 : f32 to vector<32x128xf32>
    %104 = arith.maximumf %102, %103 : vector<32x128xf32>
    %c0_66 = arith.constant 0 : index
    %c0_67 = arith.constant 0 : index
    %105 = vector.load %arg9[%c0_66, %c0_67] : memref<32x128xf32, #tpu.memory_space<vmem>>, vector<32x128xf32>
    tpu.vector_store %arg9[%c0_66, %c0_67], %104 {strides = array<i32>} : memref<32x128xf32, #tpu.memory_space<vmem>>, vector<32x128xf32>,
    return
  }
}

</mosaic_0001>

<bundles_post_ra>
// kernel: tpu_custom_call.1
= control target key start
LH: loop header
LB: loop body
LE: loop exit
PB: predicated region body
PF: predicated region fallthrough
CT: control target
= control target key end

     0   :  { %14 = vsyncpa [#allocation3], 0  ;;  %s1735_s0 = inlined_call_operand.hbm [shape: f32[32,128], index: 0, kind: input, shape index: {}]   ;;  %s1736_s1 = inlined_call_operand.hbm [shape: bf16[2,32,32], index: 1, kind: input, shape index: {}]   ;;  %s1737_s2 = inlined_call_operand.hbm [shape: bf16[3,128,128], index: 2, kind: input, shape index: {}]   ;;  %s1738_s3 = inlined_call_operand.hbm [shape: bf16[3,128,128], index: 3, kind: input, shape index: {}]   ;;  %s1739_s4 = inlined_call_operand.hbm [shape: f32[128,128], index: 4, kind: input, shape index: {}]   ;;  %s1740_s5 = inlined_call_operand.vmem [shape: f32[1,128], index: 5, kind: input, shape index: {}]   ;;  %s1741_s6 = inlined_call_operand.vmem [shape: f32[1,128], index: 6, kind: input, shape index: {}]   ;;  %s1742_s7 = inlined_call_operand.vmem [shape: f32[1,128], index: 7, kind: input, shape index: {}]   ;;  %s1743_s8 = inlined_call_operand.vmem [shape: f32[1,128], index: 8, kind: input, shape index: {}]   ;;  %s1744_s9 = inlined_call_operand.hbm [shape: f32[32,128], index: 9, kind: output, shape index: {}]  }
   0x1   :  { %15 = vsyncpa [#allocation6], 0 }
   0x2   :  { %16 = vsyncpa [#allocation9], 0  ;;  %s35_s11 = sshll.u32 %s1736_s1, 4  ;;  %s36_s11 = int_to_ptr.hbm [resolvable:$true] %s35_s11 }
   0x3   :  { %17 = vsyncpa [#allocation4], 0  ;;  %s1461_s12 = smov [#allocation5]   ;;  %s61_s16 = sshll.u32 %s1738_s3, 4  ;;  %s62_s16 = int_to_ptr.hbm [resolvable:$true] %s61_s16 }
   0x4   :  { %s37_s13 = sshll.u32 %s1461_s12, 4  ;;  %s1462_s17 = smov 64   ;;  %s38_s13 = int_to_ptr.vmem [resolvable:$true] %s37_s13 }
   0x5   :  { %s1463_s18 = smov 4   ;;  %s1464_s19 = smov [#allocation8]  }
   0x6   :  { %43 = dma.hbm_to_vmem [thread:$0]  %s36_s11, 512, %s38_s13, [#allocation6], %s1462_s17, %s1462_s17, %s1463_s18  }
   0x7   :  { %s63_s20 = sshll.u32 %s1464_s19, 4  ;;  %s22_s23 = sshll.u32 %s1735_s0, 4  ;;  %s64_s20 = int_to_ptr.vmem [resolvable:$true] %s63_s20  ;;  %s23_s23 = int_to_ptr.hbm [resolvable:$true] %s22_s23 }
   0x8   :  { %69 = dma.hbm_to_vmem [thread:$0]  %s62_s16, 3072, %s64_s20, [#allocation9], %s1462_s17, %s1462_s17, %s1463_s18  }
   0x9   :  { %s1465_s1 = smov [#allocation2]   ;;  %s48_s3 = sshll.u32 %s1737_s2, 4  ;;  %s49_s3 = int_to_ptr.hbm [resolvable:$true] %s48_s3 }
   0xa   :  { %s24_s24 = sshll.u32 %s1465_s1, 4  ;;  %s1466_s27 = smov 128   ;;  %s25_s24 = int_to_ptr.vmem [resolvable:$true] %s24_s24 }
   0xb   :  { %s1467_s28 = smov 8   ;;  %s1468_s29 = smov [#allocation7]  }
   0xc   :  { %30 = dma.hbm_to_vmem [thread:$0]  %s23_s23, 512, %s25_s24, [#allocation3], %s1466_s27, %s1466_s27, %s1467_s28  }
   0xd   :  { %s50_s30 = sshll.u32 %s1468_s29, 4  ;;  %s74_s11 = sshll.u32 %s1739_s4, 4  ;;  %s51_s30 = int_to_ptr.vmem [resolvable:$true] %s50_s30  ;;  %s75_s11 = int_to_ptr.hbm [resolvable:$true] %s74_s11 }
   0xe   :  { %56 = dma.hbm_to_vmem [thread:$0]  %s49_s3, 3072, %s51_s30, [#allocation6], %s1462_s17, %s1462_s17, %s1463_s18  }
   0xf   :  { %s1469_s12 = smov [#allocation10]  }
  0x10   :  { %s76_s13 = sshll.u32 %s1469_s12, 4  ;;  %s77_s13 = int_to_ptr.vmem [resolvable:$true] %s76_s13 }
  0x11   :  { %82 = dma.hbm_to_vmem [thread:$0]  %s75_s11, 2048, %s77_s13, [#allocation9], %s1466_s27, %s1466_s27, %s1467_s28  }
  0x12   :  { %1453 = dma.done.wait [#allocation3], 512  }
  0x13   :  { %1454 = vsyncadd [#allocation3], 4294966784 }
  0x14   :  { %1455 = dma.done.wait [#allocation6], 3584  }
  0x15   :  { %1456 = vsyncadd [#allocation6], 4294963712 }
  0x16   :  { %1457 = dma.done.wait [#allocation9], 5120  }
  0x17   :  { %1458 = vsyncadd [#allocation9], 4294962176  ;;  %v1544_v0 = vld [vmem:[#allocation2 + $0x10] sm:$0xff]  ;;  %v1546_v1 = vld [vmem:[#allocation2 + $0x18] sm:$0xff]  ;;  %vm153_vm0 = vcmask 261120   ;;  %s1004_s20 = sshll.u32 %s1744_s9, 4  ;;  %s1005_s20 = int_to_ptr.hbm [resolvable:$true] %s1004_s20 }
  0x18   :  { %v1548_v2 = vld [vmem:[#allocation2] sm:$0xff]  ;;  %v1552_v3 = vpack.c.bf16 %v1546_v1, %v1544_v0  ;;  %v1554_v4 = vld [vmem:[#allocation2 + $0x8] sm:$0xff]  ;;  %v1262_v6 = vld [vmem:[#allocation7 + $0xb8] sm:$0xff] }
  0x19   :  { %v116_v5 = vpack.c.bf16 %v1554_v4, %v1548_v2  ;;  %v1254_v7 = vld [vmem:[#allocation7 + $0x78] sm:$0xff]  ;;  %450 = vmatpush.bf16.msra.mxu0 %v1262_v6  ;;  %v1261_v9 = vld [vmem:[#allocation7 + $0xb0] sm:$0xff]  ;;  %v1560_v10 = vld [vmem:[#allocation5] sm:$0xff] }
  0x1a   :  { %166 = vmatpush.bf16.msra.mxu2 %v1552_v3  ;;  %203 = vmatpush.bf16.msra.mxu1 %v1552_v3  ;;  %v1246_v8 = vld [vmem:[#allocation7 + $0x38] sm:$0xff]  ;;  %v1562_v11 = vld [vmem:[#allocation5 + $0x10] sm:$0xff]  ;;  %v1260_v14 = vld [vmem:[#allocation7 + $0xa8] sm:$0xff] }
  0x1b   :  { %366 = vmatpush.bf16.msra.mxu3 %v1246_v8  ;;  %v1245_v12 = vld [vmem:[#allocation7 + $0x30] sm:$0xff]  ;;  %v1244_v15 = vld [vmem:[#allocation7 + $0x28] sm:$0xff]  ;;  %v1259_v17 = vld [vmem:[#allocation7 + $0xa0] sm:$0xff] }
  0x1c   :  { %v1253_v13 = vld [vmem:[#allocation7 + $0x70] sm:$0xff]  ;;  %v1252_v16 = vld [vmem:[#allocation7 + $0x68] sm:$0xff]  ;;  %v1243_v18 = vld [vmem:[#allocation7 + $0x20] sm:$0xff] }
  0x1d   :  { %451 = vmatpush.bf16.msra.mxu0 %v1261_v9  ;;  %v1251_v19 = vld [vmem:[#allocation7 + $0x60] sm:$0xff]  ;;  %v1258_v20 = vld [vmem:[#allocation7 + $0x98] sm:$0xff]  ;;  %v1568_v22 = vld [vmem:[#allocation5 + $0x8] sm:$0xff] }
  0x1e   :  { %167 = vmatpush.bf16.msra.mxu2 %v116_v5  ;;  %204 = vmatpush.bf16.msra.mxu1 %v116_v5  ;;  %v1250_v21 = vld [vmem:[#allocation7 + $0x58] sm:$0xff]  ;;  %v1249_v24 = vld [vmem:[#allocation7 + $0x50] sm:$0xff]  ;;  %v1248_v26 = vld [vmem:[#allocation7 + $0x48] sm:$0xff] }
  0x1f   :  { %367 = vmatpush.bf16.msra.mxu3 %v1245_v12  ;;  %v1570_v23 = vld [vmem:[#allocation5 + $0x18] sm:$0xff]  ;;  %v1257_v25 = vld [vmem:[#allocation7 + $0x90] sm:$0xff]  ;;  %v1256_v28 = vld [vmem:[#allocation7 + $0x88] sm:$0xff] }
  0x20   :  { %v1242_v27 = vld [vmem:[#allocation7 + $0x18] sm:$0xff]  ;;  %v1247_v29 = vld [vmem:[#allocation7 + $0x40] sm:$0xff]  ;;  %v1241_v30 = vld [vmem:[#allocation7 + $0x10] sm:$0xff] }
  0x21   :  { %1027 = vmatmul.msk.bf16.vlgmr.msra.gmra.mxu2 %vm153_vm0, %v1560_v10  ;;  %1037 = vmatmul.msk.bf16.vlgmr.msra.gmra.mxu1 %vm153_vm0, %v1562_v11  ;;  %v1255_v31 = vld [vmem:[#allocation7 + $0x80] sm:$0xff]  ;;  %v1240_v32 = vld [vmem:[#allocation7 + $0x8] sm:$0xff]  ;;  %v1577_v46 = vld [vmem:[#allocation10 + $0x78] sm:$0xff] }
  0x22   :  { %299 = vmatpush.bf16.msrb.mxu2 %v1254_v7  ;;  %452 = vmatpush.bf16.msra.mxu0 %v1260_v14  ;;  %v1239_v33 = vld [vmem:[#allocation7] sm:$0xff]  ;;  %v1581_v47 = vld [vmem:[#allocation10 + $0x70] sm:$0xff]  ;;  %v1584_v48 = vld [vmem:[#allocation10 + $0x68] sm:$0xff] }
  0x23   :  { %368 = vmatpush.bf16.msra.mxu3 %v1244_v15  ;;  %486 = vmatpush.msrb.mxu1 %v1577_v46  ;;  %v1589_v49 = vld [vmem:[#allocation10 + $0x60] sm:$0xff]  ;;  %v1593_v50 = vld [vmem:[#allocation10 + $0x58] sm:$0xff]  ;;  %v1597_v51 = vld [vmem:[#allocation10 + $0x50] sm:$0xff] }
  0x24   :  { %v1601_v52 = vld [vmem:[#allocation10 + $0x48] sm:$0xff]  ;;  %v1605_v53 = vld [vmem:[#allocation10 + $0x40] sm:$0xff]  ;;  %v1609_v54 = vld [vmem:[#allocation10 + $0x38] sm:$0xff] }
  0x25   :  { %487 = vmatpush.msrb.mxu1 %v1581_v47  ;;  %v1613_v55 = vld [vmem:[#allocation10 + $0x30] sm:$0xff]  ;;  %v1617_v56 = vld [vmem:[#allocation10 + $0x28] sm:$0xff]  ;;  %v1621_v57 = vld [vmem:[#allocation10 + $0x20] sm:$0xff] }
  0x26   :  { %300 = vmatpush.bf16.msrb.mxu2 %v1253_v13  ;;  %453 = vmatpush.bf16.msra.mxu0 %v1259_v17  ;;  %v1625_v58 = vld [vmem:[#allocation10 + $0x18] sm:$0xff]  ;;  %v1629_v60 = vld [vmem:[#allocation10 + $0x10] sm:$0xff]  ;;  %v1633_v62 = vld [vmem:[#allocation10 + $0x8] sm:$0xff] }
  0x27   :  { %369 = vmatpush.bf16.msra.mxu3 %v1243_v18  ;;  %488 = vmatpush.msrb.mxu1 %v1584_v48  ;;  %v1635_v63 = vld [vmem:[#allocation10] sm:$0xff] }
  0x29   :  { %489 = vmatpush.msrb.mxu1 %v1589_v49 }
  0x2a   :  { %301 = vmatpush.bf16.msrb.mxu2 %v1252_v16  ;;  %454 = vmatpush.bf16.msra.mxu0 %v1258_v20 }
  0x2b   :  { %370 = vmatpush.bf16.msra.mxu3 %v1242_v27  ;;  %490 = vmatpush.msrb.mxu1 %v1593_v50 }
  0x2d   :  { %491 = vmatpush.msrb.mxu1 %v1597_v51 }
  0x2e   :  { %302 = vmatpush.bf16.msrb.mxu2 %v1251_v19  ;;  %455 = vmatpush.bf16.msra.mxu0 %v1257_v25 }
  0x2f   :  { %371 = vmatpush.bf16.msra.mxu3 %v1241_v30  ;;  %492 = vmatpush.msrb.mxu1 %v1601_v52 }
  0x31   :  { %1028 = vmatmul.msk.bf16.gmra.mxu2 %vm153_vm0, %v1568_v22  ;;  %1038 = vmatmul.msk.bf16.gmra.mxu1 %vm153_vm0, %v1570_v23 }
  0x32   :  { %303 = vmatpush.bf16.msrb.mxu2 %v1250_v21  ;;  %456 = vmatpush.bf16.msra.mxu0 %v1256_v28 }
  0x33   :  { %372 = vmatpush.bf16.msra.mxu3 %v1240_v32  ;;  %493 = vmatpush.msrb.mxu1 %v1605_v53 }
  0x35   :  { %494 = vmatpush.msrb.mxu1 %v1609_v54 }
  0x36   :  { %304 = vmatpush.bf16.msrb.mxu2 %v1249_v24  ;;  %457 = vmatpush.bf16.msra.mxu0 %v1255_v31 }
  0x37   :  { %373 = vmatpush.bf16.msra.mxu3 %v1239_v33  ;;  %495 = vmatpush.msrb.mxu1 %v1613_v55 }
  0x39   :  { %496 = vmatpush.msrb.mxu1 %v1617_v56 }
  0x3a   :  { %305 = vmatpush.bf16.msrb.mxu2 %v1248_v26 }
  0x3b   :  { %532 = vmatpush.msrb.mxu3 %v1577_v46  ;;  %497 = vmatpush.msrb.mxu1 %v1621_v57 }
  0x3d   :  { %533 = vmatpush.msrb.mxu3 %v1581_v47  ;;  %498 = vmatpush.msrb.mxu1 %v1625_v58 }
  0x3e   :  { %306 = vmatpush.bf16.msrb.mxu2 %v1247_v29 }
  0x3f   :  { %534 = vmatpush.msrb.mxu3 %v1584_v48  ;;  %499 = vmatpush.msrb.mxu1 %v1629_v60 }
  0x41   :  { %307 = vmatmul.bf16.vlgmr.msrb.gmra.mxu2 %v116_v5  ;;  %535 = vmatpush.msrb.mxu3 %v1589_v49  ;;  %v1470_v5 = vmov 4.0  }
  0x42   :  { %500 = vmatpush.msrb.mxu1 %v1633_v62  ;;  %1301 = vrcp.f32 %v1470_v5 }
  0x43   :  { %536 = vmatpush.msrb.mxu3 %v1593_v50 }
  0x44   :  { %501 = vmatpush.msrb.mxu1 %v1635_v63 }
  0x45   :  { %537 = vmatpush.msrb.mxu3 %v1597_v51 }
  0x47   :  { %538 = vmatpush.msrb.mxu3 %v1601_v52 }
  0x48   :  { %v1302_v9 = vpop.eup %1301 }
  0x49   :  { %539 = vmatpush.msrb.mxu3 %v1605_v53  ;;  %v479_v12 = vmul.f32 4.0, %v1302_v9  ;;  %vm483_vm1 = vweird.f32 %v1302_v9 }
  0x4b   :  { %540 = vmatpush.msrb.mxu3 %v1609_v54  ;;  %v480_v16 = vsub.f32 1.0, %v479_v12 }
  0x4d   :  { %541 = vmatpush.msrb.mxu3 %v1613_v55  ;;  %v481_v20 = vmul.f32 %v1302_v9, %v480_v16 }
  0x4f   :  { %542 = vmatpush.msrb.mxu3 %v1617_v56  ;;  %v482_v28 = vadd.f32 %v1302_v9, %v481_v20 }
  0x51   :  { %312 = vmatmul.bf16.gmra.mxu2 %v1552_v3  ;;  %543 = vmatpush.msrb.mxu3 %v1621_v57 }
  0x53   :  { %544 = vmatpush.msrb.mxu3 %v1625_v58 }
  0x55   :  { %545 = vmatpush.msrb.mxu3 %v1629_v60 }
  0x57   :  { %546 = vmatpush.msrb.mxu3 %v1633_v62 }
  0x59   :  { %547 = vmatpush.msrb.mxu3 %v1635_v63 }
  0x9e   :  { %v206_v34 = vpop.f32.mrf.mxu1 }
  0xa4   :  { %v169_v35 = vpop.f32.mrf.mxu2 }
  0xa6   :  { %v208_v36 = vpop.f32.mrf.mxu1 }
  0xa7   :  { %v216_v37 = vpack.c.bf16 %v208_v36, %v206_v34  ;;  %v1641_v34 = vsel %vm483_vm1, %v1302_v9, %v482_v28  ;;  %v1274_v28 = vld [vmem:[#allocation8 + $0x58] sm:$0xff] }
  0xa9   :  { %458 = vmatmul.bf16.vlgmr.msra.gmra.mxu0 %v216_v37  ;;  %v1471_v37 = vmov 8.0  }
  0xaa   :  { %1303 = vrcp.f32 %v1471_v37  ;;  %v1271_v37 = vld [vmem:[#allocation8 + $0x40] sm:$0xff] }
  0xac   :  { %v171_v38 = vpop.f32.mrf.mxu2 }
  0xad   :  { %v179_v39 = vpack.c.bf16 %v171_v38, %v169_v35 }
  0xae   :  { %v211_v40 = vpop.f32.mrf.mxu1 }
  0xaf   :  { %374 = vmatmul.bf16.vlgmr.msra.gmra.mxu3 %v179_v39 }
  0xb0   :  { %v1304_v38 = vpop.eup %1303 }
  0xb1   :  { %v513_v39 = vmul.f32 8.0, %v1304_v38  ;;  %vm517_vm2 = vweird.f32 %v1304_v38 }
  0xb4   :  { %v174_v41 = vpop.f32.mrf.mxu2 }
  0xb6   :  { %v213_v42 = vpop.f32.mrf.mxu1 }
  0xb7   :  { %v217_v43 = vpack.c.bf16 %v213_v42, %v211_v40  ;;  %v514_v40 = vsub.f32 1.0, %v513_v39 }
  0xb9   :  { %463 = vmatmul.bf16.gmra.mxu0 %v217_v43  ;;  %v515_v43 = vmul.f32 %v1304_v38, %v514_v40 }
  0xbc   :  { %v176_v44 = vpop.f32.mrf.mxu2 }
  0xbd   :  { %v180_v45 = vpack.c.bf16 %v176_v44, %v174_v41 }
  0xbf   :  { %379 = vmatmul.bf16.gmra.mxu3 %v180_v45 }
  0xc4   :  { %v308_v59 = vpop.f32.mrf.mxu2 }
  0xcc   :  { %v310_v6 = vpop.f32.mrf.mxu2 }
  0xd4   :  { %v313_v13 = vpop.f32.mrf.mxu2 }
  0xdc   :  { %v315_v26 = vpop.f32.mrf.mxu2 }
 0x126   :  { %v459_v61 = vpop.f32.mrf.mxu0 }
 0x12e   :  { %v461_v7 = vpop.f32.mrf.mxu0 }
 0x132   :  { %v375_v3 = vpop.f32.mrf.mxu3 }
 0x133   :  { %v376_v18 = vadd.f32 %v375_v3, %v308_v59  ;;  %v516_v59 = vadd.f32 %v1304_v38, %v515_v43 }
 0x135   :  { %v469_v24 = vadd.f32 %v459_v61, %v376_v18  ;;  %v1644_v5 = vsel %vm517_vm2, %v1304_v38, %v516_v59 }
 0x136   :  { %v464_v14 = vpop.f32.mrf.mxu0 }
 0x13a   :  { %v377_v8 = vpop.f32.mrf.mxu3 }
 0x13b   :  { %v378_v17 = vadd.f32 %v377_v8, %v310_v6 }
 0x13d   :  { %v470_v21 = vadd.f32 %v461_v7, %v378_v17 }
 0x13e   :  { %v466_v31 = vpop.f32.mrf.mxu0 }
 0x13f   :  { %v475_v29 = vadd.f32 %v470_v21, %v469_v24 }
 0x142   :  { %v380_v15 = vpop.f32.mrf.mxu3 }
 0x143   :  { %v381_v19 = vadd.f32 %v380_v15, %v313_v13 }
 0x145   :  { %v471_v25 = vadd.f32 %v464_v14, %v381_v19 }
 0x147   :  { %v476_v32 = vadd.f32 %v475_v29, %v471_v25 }
 0x14a   :  { %v382_v27 = vpop.f32.mrf.mxu3 }
 0x14b   :  { %v383_v30 = vadd.f32 %v382_v27, %v315_v26  ;;  %v1276_v26 = vld [vmem:[#allocation8 + $0x68] sm:$0xff]  ;;  %v1275_v27 = vld [vmem:[#allocation8 + $0x60] sm:$0xff] }
 0x14d   :  { %v472_v33 = vadd.f32 %v466_v31, %v383_v30  ;;  %v1273_v31 = vld [vmem:[#allocation8 + $0x50] sm:$0xff] }
 0x14f   :  { %v477_v35 = vadd.f32 %v476_v32, %v472_v33 }
 0x151   :  { %v485_v36 = vmul.f32 %v1641_v34, %v477_v35  ;;  %v1272_v35 = vld [vmem:[#allocation8 + $0x48] sm:$0xff] }
 0x153   :  { %502 = vmatmul.f32.vlgmr.msrb.gmra.mxu1 %v485_v36 }
 0x1d0   :  { %v503_v41 = vpop.f32.mrf.mxu1 }
 0x1d1   :  { %v506_v42 = vrot.slane %v503_v41, 4 }
 0x1d3   :  { %v507_v44 = vadd.f32 %v506_v42, %v503_v41 }
 0x1d5   :  { %v508_v45 = vrot.slane %v507_v44, 2 }
 0x1d7   :  { %v509_v61 = vadd.f32 %v508_v45, %v507_v44 }
 0x1d9   :  { %v510_v3 = vrot.slane %v509_v61, 1 }
 0x1db   :  { %v511_v6 = vadd.f32 %v510_v3, %v509_v61  ;;  %v473_v61 = vld [vmem:[%s1740_s5] sm:$0x1] }
 0x1dd   :  { %v519_v7 = vmul.f32 %v1644_v5, %v511_v6 }
 0x1df   :  { %v1647_v8 = vsub.f32 %v469_v24, %v519_v7  ;;  %v1649_v9 = vsub.f32 %v470_v21, %v519_v7  ;;  %v1651_v12 = vsub.f32 %v471_v25, %v519_v7  ;;  %v1653_v13 = vsub.f32 %v472_v33, %v519_v7  ;;  %v1278_v24 = vld [vmem:[#allocation8 + $0x78] sm:$0xff]  ;;  %v1277_v25 = vld [vmem:[#allocation8 + $0x70] sm:$0xff] }
 0x1e0   :  { %714 = vmatpush.bf16.msrb.mxu0 %v1278_v24 }
 0x1e1   :  { %v524_v14 = vmul.f32 %v1647_v8, %v1647_v8  ;;  %v525_v15 = vmul.f32 %v1649_v9, %v1649_v9  ;;  %v526_v16 = vmul.f32 %v1651_v12, %v1651_v12  ;;  %v527_v18 = vmul.f32 %v1653_v13, %v1653_v13 }
 0x1e3   :  { %v528_v17 = vadd.f32 %v525_v15, %v524_v14  ;;  %v1299_v15 = vld [vmem:[%s1741_s6] ss:$0 sm:$0xff] }
 0x1e4   :  { %715 = vmatpush.bf16.msrb.mxu0 %v1277_v25 }
 0x1e5   :  { %v529_v19 = vadd.f32 %v528_v17, %v526_v16  ;;  %v1286_v16 = vld [vmem:[#allocation8 + $0xb8] sm:$0xff] }
 0x1e6   :  { %865 = vmatpush.bf16.msra.mxu2 %v1286_v16 }
 0x1e7   :  { %v530_v20 = vadd.f32 %v529_v19, %v527_v18 }
 0x1e8   :  { %716 = vmatpush.bf16.msrb.mxu0 %v1276_v26 }
 0x1e9   :  { %v531_v21 = vmul.f32 %v530_v20, %v1641_v34 }
 0x1eb   :  { %548 = vmatmul.f32.vlgmr.msrb.gmra.mxu3 %v531_v21  ;;  %v1285_v21 = vld [vmem:[#allocation8 + $0xb0] sm:$0xff] }
 0x1ec   :  { %717 = vmatpush.bf16.msrb.mxu0 %v1275_v27  ;;  %866 = vmatpush.bf16.msra.mxu2 %v1285_v21 }
 0x1f0   :  { %718 = vmatpush.bf16.msrb.mxu0 %v1274_v28 }
 0x1f4   :  { %719 = vmatpush.bf16.msrb.mxu0 %v1273_v31  ;;  %v1269_v31 = vld [vmem:[#allocation8 + $0x30] sm:$0xff] }
 0x1f8   :  { %720 = vmatpush.bf16.msrb.mxu0 %v1272_v35 }
 0x1fc   :  { %721 = vmatpush.bf16.msrb.mxu0 %v1271_v37 }
 0x200   :  { %933 = vmatpush.msra.mxu0 %v1577_v46 }
 0x202   :  { %934 = vmatpush.msra.mxu0 %v1581_v47 }
 0x204   :  { %935 = vmatpush.msra.mxu0 %v1584_v48 }
 0x206   :  { %936 = vmatpush.msra.mxu0 %v1589_v49 }
 0x208   :  { %937 = vmatpush.msra.mxu0 %v1593_v50 }
 0x20a   :  { %938 = vmatpush.msra.mxu0 %v1597_v51 }
 0x20c   :  { %939 = vmatpush.msra.mxu0 %v1601_v52 }
 0x20e   :  { %940 = vmatpush.msra.mxu0 %v1605_v53 }
 0x210   :  { %941 = vmatpush.msra.mxu0 %v1609_v54 }
 0x212   :  { %942 = vmatpush.msra.mxu0 %v1613_v55 }
 0x214   :  { %943 = vmatpush.msra.mxu0 %v1617_v56 }
 0x216   :  { %944 = vmatpush.msra.mxu0 %v1621_v57 }
 0x218   :  { %945 = vmatpush.msra.mxu0 %v1625_v58 }
 0x21a   :  { %946 = vmatpush.msra.mxu0 %v1629_v60 }
 0x21c   :  { %947 = vmatpush.msra.mxu0 %v1633_v62 }
 0x21e   :  { %948 = vmatpush.msra.mxu0 %v1635_v63 }
 0x26e   :  { %v549_v29 = vpop.f32.mrf.mxu3 }
 0x26f   :  { %v552_v30 = vrot.slane %v549_v29, 4 }
 0x271   :  { %v553_v32 = vadd.f32 %v552_v30, %v549_v29 }
 0x273   :  { %v554_v33 = vrot.slane %v553_v32, 2 }
 0x275   :  { %v555_v36 = vadd.f32 %v554_v33, %v553_v32  ;;  %v1268_v32 = vld [vmem:[#allocation8 + $0x28] sm:$0xff]  ;;  %v1267_v33 = vld [vmem:[#allocation8 + $0x20] sm:$0xff] }
 0x277   :  { %v556_v38 = vrot.slane %v555_v36, 1 }
 0x279   :  { %v557_v39 = vadd.f32 %v556_v38, %v555_v36 }
 0x27b   :  { %v558_v40 = vmul.f32 %v557_v39, %v1644_v5 }
 0x27d   :  { %v559_v41 = vadd.f32 1e-05, %v558_v40 }
 0x27f   :  { %1305 = vrsqrt.f32 %v559_v41  ;;  %vm566_vm4 = vweird.f32 %v559_v41 }
 0x285   :  { %v1306_v42 = vpop.eup %1305 }
 0x286   :  { %v561_v43 = vmul.f32 %v1306_v42, %v559_v41  ;;  %vm567_vm3 = vweird.f32 %v1306_v42 }
 0x287   :  { %vm568_vm5 = vmor %vm566_vm4, %vm567_vm3 }
 0x288   :  { %v562_v44 = vmul.f32 %v1306_v42, %v561_v43 }
 0x28a   :  { %v563_v45 = vmul.f32 0.5, %v562_v44 }
 0x28c   :  { %v564_v59 = vsub.f32 1.5, %v563_v45 }
 0x28e   :  { %v565_v3 = vmul.f32 %v1306_v42, %v564_v59 }
 0x290   :  { %v569_v6 = vsel %vm568_vm5, %v1306_v42, %v565_v3 }
 0x291   :  { %v570_v7 = vmul.f32 %v569_v6, %v473_v61 }
 0x293   :  { %v572_v14 = vperm.slane %v570_v7, 0 }
 0x295   :  { %v576_v17 = vmul.f32 %v572_v14, %v1651_v12  ;;  %v577_v18 = vmul.f32 %v572_v14, %v1653_v13  ;;  %v574_v19 = vmul.f32 %v572_v14, %v1647_v8  ;;  %v575_v20 = vmul.f32 %v572_v14, %v1649_v9  ;;  %v1270_v9 = vld [vmem:[#allocation8 + $0x38] sm:$0xff] }
 0x297   :  { %v583_v24 = vadd.f32 %v1299_v15, %v576_v17  ;;  %v584_v25 = vadd.f32 %v1299_v15, %v577_v18  ;;  %v581_v26 = vadd.f32 %v1299_v15, %v574_v19  ;;  %v582_v27 = vadd.f32 %v1299_v15, %v575_v20 }
 0x299   :  { %v587_v28 = vmax.f32 %v583_v24, 0.0  ;;  %v588_v29 = vmax.f32 %v584_v25, 0.0  ;;  %v585_v30 = vmax.f32 %v581_v26, 0.0  ;;  %v586_v12 = vmax.f32 %v582_v27, 0.0 }
 0x29b   :  { %v590_v8 = vpack.c.bf16 %v588_v29, %v587_v28  ;;  %v589_v13 = vpack.c.bf16 %v586_v12, %v585_v30 }
 0x29d   :  { %597 = vmatpush.bf16.msra.mxu1 %v590_v8  ;;  %618 = vmatpush.bf16.msra.mxu3 %v590_v8 }
 0x29e   :  { %722 = vmatmul.bf16.vlgmr.msrb.gmra.mxu0 %v589_v13 }
 0x2a1   :  { %598 = vmatpush.bf16.msra.mxu1 %v589_v13  ;;  %619 = vmatpush.bf16.msra.mxu3 %v589_v13 }
 0x2a4   :  { %1135 = vmatmul.msk.bf16.vlgmr.msra.gmra.mxu1 %vm153_vm0, %v1560_v10  ;;  %1137 = vmatmul.msk.bf16.vlgmr.msra.gmra.mxu3 %vm153_vm0, %v1562_v11  ;;  %v1284_v10 = vld [vmem:[#allocation8 + $0xa8] sm:$0xff]  ;;  %v1266_v11 = vld [vmem:[#allocation8 + $0x18] sm:$0xff] }
 0x2a5   :  { %781 = vmatpush.bf16.msrb.mxu1 %v1270_v9  ;;  %894 = vmatpush.msrb.mxu3 %v1577_v46  ;;  %v1282_v46 = vld [vmem:[#allocation8 + $0x98] sm:$0xff] }
 0x2a6   :  { %867 = vmatpush.bf16.msra.mxu2 %v1284_v10 }
 0x2a7   :  { %895 = vmatpush.msrb.mxu3 %v1581_v47  ;;  %v1264_v47 = vld [vmem:[#allocation8 + $0x8] sm:$0xff] }
 0x2a9   :  { %782 = vmatpush.bf16.msrb.mxu1 %v1269_v31  ;;  %896 = vmatpush.msrb.mxu3 %v1584_v48  ;;  %v1281_v48 = vld [vmem:[#allocation8 + $0x90] sm:$0xff] }
 0x2ab   :  { %897 = vmatpush.msrb.mxu3 %v1589_v49  ;;  %v1263_v49 = vld [vmem:[#allocation8] sm:$0xff] }
 0x2ad   :  { %783 = vmatpush.bf16.msrb.mxu1 %v1268_v32  ;;  %898 = vmatpush.msrb.mxu3 %v1593_v50  ;;  %v1280_v50 = vld [vmem:[#allocation8 + $0x88] sm:$0xff] }
 0x2ae   :  { %727 = vmatmul.bf16.gmra.mxu0 %v590_v8 }
 0x2af   :  { %899 = vmatpush.msrb.mxu3 %v1597_v51  ;;  %v1279_v51 = vld [vmem:[#allocation8 + $0x80] sm:$0xff] }
 0x2b1   :  { %784 = vmatpush.bf16.msrb.mxu1 %v1267_v33  ;;  %900 = vmatpush.msrb.mxu3 %v1601_v52 }
 0x2b3   :  { %901 = vmatpush.msrb.mxu3 %v1605_v53 }
 0x2b4   :  { %1136 = vmatmul.msk.bf16.gmra.mxu1 %vm153_vm0, %v1568_v22  ;;  %1138 = vmatmul.msk.bf16.gmra.mxu3 %vm153_vm0, %v1570_v23  ;;  %v1283_v22 = vld [vmem:[#allocation8 + $0xa0] sm:$0xff]  ;;  %v1265_v23 = vld [vmem:[#allocation8 + $0x10] sm:$0xff] }
 0x2b5   :  { %902 = vmatpush.msrb.mxu3 %v1609_v54  ;;  %785 = vmatpush.bf16.msrb.mxu1 %v1266_v11 }
 0x2b6   :  { %868 = vmatpush.bf16.msra.mxu2 %v1283_v22 }
 0x2b7   :  { %903 = vmatpush.msrb.mxu3 %v1613_v55 }
 0x2b9   :  { %904 = vmatpush.msrb.mxu3 %v1617_v56  ;;  %786 = vmatpush.bf16.msrb.mxu1 %v1265_v23 }
 0x2ba   :  { %869 = vmatpush.bf16.msra.mxu2 %v1282_v46 }
 0x2bb   :  { %905 = vmatpush.msrb.mxu3 %v1621_v57 }
 0x2bd   :  { %906 = vmatpush.msrb.mxu3 %v1625_v58  ;;  %787 = vmatpush.bf16.msrb.mxu1 %v1264_v47 }
 0x2be   :  { %870 = vmatpush.bf16.msra.mxu2 %v1281_v48 }
 0x2bf   :  { %907 = vmatpush.msrb.mxu3 %v1629_v60 }
 0x2c1   :  { %908 = vmatpush.msrb.mxu3 %v1633_v62  ;;  %788 = vmatpush.bf16.msrb.mxu1 %v1263_v49 }
 0x2c2   :  { %871 = vmatpush.bf16.msra.mxu2 %v1280_v50 }
 0x2c3   :  { %909 = vmatpush.msrb.mxu3 %v1635_v63 }
 0x2c6   :  { %872 = vmatpush.bf16.msra.mxu2 %v1279_v51 }
 0x31b   :  { %v723_v38 = vpop.f32.mrf.mxu0 }
 0x321   :  { %v600_v52 = vpop.f32.mrf.mxu1 }
 0x323   :  { %v725_v41 = vpop.f32.mrf.mxu0 }
 0x327   :  { %v621_v53 = vpop.f32.mrf.mxu3 }
 0x329   :  { %v602_v54 = vpop.f32.mrf.mxu1 }
 0x32a   :  { %v610_v55 = vpack.c.bf16 %v602_v54, %v600_v52 }
 0x32b   :  { %v728_v44 = vpop.f32.mrf.mxu0 }
 0x32c   :  { %789 = vmatmul.bf16.vlgmr.msrb.gmra.mxu1 %v610_v55 }
 0x32f   :  { %v623_v56 = vpop.f32.mrf.mxu3 }
 0x330   :  { %v631_v57 = vpack.c.bf16 %v623_v56, %v621_v53 }
 0x331   :  { %v605_v58 = vpop.f32.mrf.mxu1 }
 0x332   :  { %873 = vmatmul.bf16.vlgmr.msra.gmra.mxu2 %v631_v57 }
 0x333   :  { %v730_v16 = vpop.f32.mrf.mxu0 }
 0x337   :  { %v626_v60 = vpop.f32.mrf.mxu3 }
 0x339   :  { %v607_v62 = vpop.f32.mrf.mxu1 }
 0x33a   :  { %v611_v63 = vpack.c.bf16 %v607_v62, %v605_v58 }
 0x33c   :  { %794 = vmatmul.bf16.gmra.mxu1 %v611_v63 }
 0x33f   :  { %v628_v35 = vpop.f32.mrf.mxu3 }
 0x340   :  { %v632_v36 = vpack.c.bf16 %v628_v35, %v626_v60 }
 0x342   :  { %878 = vmatmul.bf16.gmra.mxu2 %v632_v36 }
 0x3a9   :  { %v790_v37 = vpop.f32.mrf.mxu1 }
 0x3aa   :  { %v791_v61 = vadd.f32 %v790_v37, %v723_v38 }
 0x3b1   :  { %v792_v39 = vpop.f32.mrf.mxu1 }
 0x3b2   :  { %v793_v59 = vadd.f32 %v792_v39, %v725_v41 }
 0x3b5   :  { %v874_v40 = vpop.f32.mrf.mxu2 }
 0x3b6   :  { %v884_v14 = vadd.f32 %v874_v40, %v791_v61 }
 0x3b9   :  { %v795_v43 = vpop.f32.mrf.mxu1 }
 0x3ba   :  { %v796_v3 = vadd.f32 %v795_v43, %v728_v44 }
 0x3bd   :  { %v876_v42 = vpop.f32.mrf.mxu2 }
 0x3be   :  { %v885_v6 = vadd.f32 %v876_v42, %v793_v59 }
 0x3c0   :  { %v890_v17 = vadd.f32 %v885_v6, %v884_v14 }
 0x3c1   :  { %v797_v7 = vpop.f32.mrf.mxu1 }
 0x3c2   :  { %v798_v18 = vadd.f32 %v797_v7, %v730_v16 }
 0x3c5   :  { %v879_v45 = vpop.f32.mrf.mxu2 }
 0x3c6   :  { %v886_v15 = vadd.f32 %v879_v45, %v796_v3 }
 0x3c8   :  { %v891_v20 = vadd.f32 %v890_v17, %v886_v15 }
 0x3cd   :  { %v881_v19 = vpop.f32.mrf.mxu2 }
 0x3ce   :  { %v887_v21 = vadd.f32 %v881_v19, %v798_v18 }
 0x3d0   :  { %v892_v24 = vadd.f32 %v891_v20, %v887_v21 }
 0x3d2   :  { %v893_v25 = vmul.f32 %v892_v24, %v1641_v34 }
 0x3d4   :  { %910 = vmatmul.f32.vlgmr.msrb.gmra.mxu3 %v893_v25 }
 0x457   :  { %v911_v26 = vpop.f32.mrf.mxu3 }
 0x458   :  { %v914_v27 = vrot.slane %v911_v26, 4 }
 0x45a   :  { %v915_v28 = vadd.f32 %v914_v27, %v911_v26 }
 0x45c   :  { %v916_v29 = vrot.slane %v915_v28, 2 }
 0x45e   :  { %v917_v30 = vadd.f32 %v916_v29, %v915_v28 }
 0x460   :  { %v918_v12 = vrot.slane %v917_v30, 1 }
 0x462   :  { %v919_v8 = vadd.f32 %v918_v12, %v917_v30 }
 0x464   :  { %v920_v13 = vmul.f32 %v919_v8, %v1644_v5 }
 0x466   :  { %v921_v9 = vsub.f32 %v884_v14, %v920_v13  ;;  %v922_v31 = vsub.f32 %v885_v6, %v920_v13  ;;  %v923_v32 = vsub.f32 %v886_v15, %v920_v13  ;;  %v924_v33 = vsub.f32 %v887_v21, %v920_v13 }
 0x468   :  { %v925_v10 = vmul.f32 %v921_v9, %v921_v9  ;;  %v926_v11 = vmul.f32 %v922_v31, %v922_v31  ;;  %v927_v22 = vmul.f32 %v923_v32, %v923_v32  ;;  %v928_v46 = vmul.f32 %v924_v33, %v924_v33 }
 0x46a   :  { %v929_v23 = vadd.f32 %v926_v11, %v925_v10 }
 0x46c   :  { %v930_v47 = vadd.f32 %v929_v23, %v927_v22 }
 0x46e   :  { %v931_v48 = vadd.f32 %v930_v47, %v928_v46 }
 0x470   :  { %v932_v49 = vmul.f32 %v931_v48, %v1641_v34  ;;  %v888_v34 = vld [vmem:[%s1742_s7] sm:$0x1]  ;;  %s1472_s7 = smov [#allocation11]  }
 0x472   :  { %949 = vmatmul.f32.vlgmr.msra.gmra.mxu0 %v932_v49 }
 0x4ef   :  { %v950_v50 = vpop.f32.mrf.mxu0 }
 0x4f0   :  { %v953_v51 = vrot.slane %v950_v50, 4 }
 0x4f2   :  { %v954_v52 = vadd.f32 %v953_v51, %v950_v50 }
 0x4f4   :  { %v955_v53 = vrot.slane %v954_v52, 2 }
 0x4f6   :  { %v956_v54 = vadd.f32 %v955_v53, %v954_v52 }
 0x4f8   :  { %v957_v55 = vrot.slane %v956_v54, 1 }
 0x4fa   :  { %v958_v56 = vadd.f32 %v957_v55, %v956_v54 }
 0x4fc   :  { %v959_v57 = vmul.f32 %v958_v56, %v1644_v5  ;;  %v1300_v5 = vld [vmem:[%s1743_s8] ss:$0 sm:$0xff]  ;;  %s1002_s8 = sshll.u32 %s1472_s7, 4  ;;  %s1003_s8 = int_to_ptr.vmem [resolvable:$true] %s1002_s8 }
 0x4fe   :  { %v960_v58 = vadd.f32 1e-05, %v959_v57 }
 0x500   :  { %1307 = vrsqrt.f32 %v960_v58  ;;  %vm967_vm7 = vweird.f32 %v960_v58 }
 0x506   :  { %v1308_v60 = vpop.eup %1307 }
 0x507   :  { %v962_v62 = vmul.f32 %v1308_v60, %v960_v58  ;;  %vm968_vm6 = vweird.f32 %v1308_v60 }
 0x508   :  { %vm969_vm8 = vmor %vm967_vm7, %vm968_vm6 }
 0x509   :  { %v963_v63 = vmul.f32 %v1308_v60, %v962_v62 }
 0x50b   :  { %v964_v35 = vmul.f32 0.5, %v963_v63 }
 0x50d   :  { %v965_v36 = vsub.f32 1.5, %v964_v35 }
 0x50f   :  { %v966_v37 = vmul.f32 %v1308_v60, %v965_v36 }
 0x511   :  { %v970_v38 = vsel %vm969_vm8, %v1308_v60, %v966_v37 }
 0x512   :  { %v971_v39 = vmul.f32 %v970_v38, %v888_v34 }
 0x514   :  { %v973_v40 = vperm.slane %v971_v39, 0 }
 0x516   :  { %v975_v41 = vmul.f32 %v973_v40, %v921_v9  ;;  %v976_v42 = vmul.f32 %v973_v40, %v922_v31  ;;  %v977_v43 = vmul.f32 %v973_v40, %v923_v32  ;;  %v978_v44 = vmul.f32 %v973_v40, %v924_v33 }
 0x518   :  { %v982_v45 = vadd.f32 %v1300_v5, %v975_v41  ;;  %v983_v59 = vadd.f32 %v1300_v5, %v976_v42  ;;  %v984_v61 = vadd.f32 %v1300_v5, %v977_v43  ;;  %v985_v3 = vadd.f32 %v1300_v5, %v978_v44 }
 0x51a   :  { %v986_v6 = vadd.f32 %v982_v45, %v1548_v2  ;;  %v987_v7 = vadd.f32 %v983_v59, %v1554_v4  ;;  %v988_v14 = vadd.f32 %v984_v61, %v1544_v0  ;;  %v989_v15 = vadd.f32 %v985_v3, %v1546_v1 }
 0x51c   :  { %v990_v16 = vmax.f32 %v986_v6, 0.0  ;;  %v991_v17 = vmax.f32 %v987_v7, 0.0  ;;  %v992_v18 = vmax.f32 %v988_v14, 0.0  ;;  %v993_v19 = vmax.f32 %v989_v15, 0.0 }
 0x51e   :  { %994 = vst [vmem:[#allocation11] sm:$0xff] %v990_v16 }
 0x51f   :  { %995 = vst [vmem:[#allocation11 + $0x8] sm:$0xff] %v991_v17 }
 0x520   :  { %996 = vst [vmem:[#allocation11 + $0x10] sm:$0xff] %v992_v18 }
 0x521   :  { %997 = vst [vmem:[#allocation11 + $0x18] sm:$0xff] %v993_v19 }
 0x522   :  { %1010 = dma.vmem_to_hbm [thread:$0]  %s1003_s8, 512, %s1005_s20, [#allocation4], %s1466_s27, %s1466_s27, %s1467_s28  }
 0x523   :  { %1459 = dma.done.wait [#allocation4], 512  }
 0x524   :  { %1460 = vsyncadd [#allocation4], 4294966784 }
 0x525   :  { %1015 = vsyncpa [#allocation3], 1 }
 0x526   :  { %1016 = vsyncpa [#allocation6], 1 }
 0x527   :  { %1017 = vsyncpa [#allocation9], 1 }
 0x528   :  { %1018 = vsyncpa [#allocation4], 1 }

</bundles_post_ra>
